<compile_context>
chip_gen: v7x
topology: tpu7x:2x2x1
jax: 0.10.0
libtpu: 0.0.40
codegen_flags: <defaults>
</compile_context>

<pallas_src>
import jax
import jax.numpy as jnp
from jax.experimental import pallas as pl
from jax.experimental.pallas import tpu as pltpu

_TILE_BYTES_TARGET = 2 * 1024 * 1024  # ~2 MiB per tile (x2 buffers x in+out)


def _round_up(a, b):
    return ((a + b - 1) // b) * b


def _round_down(a, b):
    return (a // b) * b


def _sublane_multiple(dtype):
    # 8 sublanes of 32-bit; sub-32-bit dtypes pack along sublanes.
    itemsize = jnp.dtype(dtype).itemsize
    return max(8, 32 // itemsize)


def _star_relu_kernel(x_ref, scale_ref, bias_ref, o_ref):
    # x_ref: (tm, cols) VMEM tile; scale_ref/bias_ref: (1,) f32 SMEM scalars.
    x = x_ref[...]
    s = scale_ref[0].astype(x.dtype)
    b = bias_ref[0].astype(x.dtype)
    r = jnp.maximum(x, jnp.zeros((), x.dtype))      # ReLU (VPU)
    o_ref[...] = (s * (r * r) + b).astype(o_ref.dtype)


def star_relu(x, scale, bias):
    """StarReLU: scale * relu(x)**2 + bias, elementwise over any-shaped x."""
    orig_shape = x.shape
    orig_dtype = x.dtype
    flat = x.reshape(-1)
    m = flat.size
    itemsize = jnp.dtype(orig_dtype).itemsize
    sub = _sublane_multiple(orig_dtype)

    # Widest lane-dense column count that divides m exactly -> zero padding.
    cols = None
    for c in (512, 256, 128):
        if m % c == 0:
            cols = c
            break
    if cols is None:
        # Rare ragged case: minimal pad to a multiple of 128.
        # TODO(synk): handle the <128-element remainder with an in-kernel
        # masked tail block instead of a wrapper-side pad+slice.
        cols = 128
        padded = _round_up(m, cols)
        flat = jnp.pad(flat, (0, padded - m))
    else:
        padded = m

    rows = padded // cols
    x2d = flat.reshape(rows, cols)

    # Row tile: multiple of the sublane quantum, ~2 MiB budget, and capped at
    # ~rows/2 so the grid has >= 2 balanced steps (v7x megacore sharding).
    max_rows = max(sub, _round_down(_TILE_BYTES_TARGET // (cols * itemsize), sub))
    half_rows = max(sub, _round_up(pl.cdiv(rows, 2), sub))
    tm = min(max_rows, half_rows)
    grid = pl.cdiv(rows, tm)

    scale = jnp.asarray(scale, dtype=jnp.float32).reshape(1)
    bias = jnp.asarray(bias, dtype=jnp.float32).reshape(1)

    out2d = pl.pallas_call(
        _star_relu_kernel,
        out_shape=jax.ShapeDtypeStruct((rows, cols), orig_dtype),
        grid_spec=pltpu.PrefetchScalarGridSpec(
            num_scalar_prefetch=0,
            grid=(grid,),
            in_specs=[
                pl.BlockSpec((tm, cols), lambda i: (i, 0)),
                pl.BlockSpec(memory_space=pltpu.MemorySpace.SMEM),
                pl.BlockSpec(memory_space=pltpu.MemorySpace.SMEM),
            ],
            out_specs=pl.BlockSpec((tm, cols), lambda i: (i, 0)),
        ),
        compiler_params=pltpu.CompilerParams(
            dimension_semantics=("parallel",)),
    )(x2d, scale, bias)

    out = out2d.reshape(-1)
    if padded != m:
        out = out[:m]
    return out.reshape(orig_shape)


if __name__ == "__main__":
    key = jax.random.PRNGKey(0)

    # Learnable scalar parameters (module defaults are 1.0 / 0.0; use
    # non-trivial values so the scale/bias math is actually exercised).
    scale = jnp.array([1.5], dtype=jnp.float32)
    bias = jnp.array([-0.25], dtype=jnp.float32)

    # Small activation-shaped input: (N, C, H, W) = (2, 4, 16, 16).
    k1, k2 = jax.random.split(key)
    x = jax.random.normal(k1, (2, 4, 16, 16), dtype=jnp.float32)
    out = jax.block_until_ready(star_relu(x, scale, bias))
    ref = scale[0] * jnp.maximum(x, 0.0) ** 2 + bias[0]
    assert out.shape == x.shape and out.dtype == x.dtype
    assert jnp.allclose(out, ref, atol=1e-6, rtol=1e-6)

    # Ragged shape (element count not a multiple of 128) exercises the
    # fallback pad path.
    x2 = jax.random.normal(k2, (3, 5, 7), dtype=jnp.float32)
    out2 = jax.block_until_ready(star_relu(x2, scale, bias))
    ref2 = scale[0] * jnp.maximum(x2, 0.0) ** 2 + bias[0]
    assert out2.shape == x2.shape and out2.dtype == x2.dtype
    assert jnp.allclose(out2, ref2, atol=1e-6, rtol=1e-6)

    print("KERNEL_OK")
</pallas_src>

<mosaic_0001>
module attributes {stable_mosaic.version = 11 : i64} {
  func.func @_star_relu_kernel(%arg0: i32, %arg1: memref<8x512xf32, #tpu.memory_space<vmem>>, %arg2: memref<1xf32, #tpu.memory_space<smem>>, %arg3: memref<1xf32, #tpu.memory_space<smem>>, %arg4: memref<8x512xf32, #tpu.memory_space<vmem>>) attributes {dimension_semantics = [#tpu.dimension_semantics<parallel>], iteration_bounds = array<i64: 1>, scalar_prefetch = 0 : i64, scratch_operands = 0 : i64, tpu.core_type = #tpu.core_type<tc>, window_params = [{transform_indices = @transform_0, window_bounds = array<i64: 8, 512>}, {transform_indices = @transform_1, window_bounds = array<i64: 1>}, {transform_indices = @transform_2, window_bounds = array<i64: 1>}, {transform_indices = @transform_3, window_bounds = array<i64: 8, 512>}]} {
    %c0 = arith.constant 0 : index
    %c0_0 = arith.constant 0 : index
    %0 = vector.load %arg1[%c0, %c0_0] : memref<8x512xf32, #tpu.memory_space<vmem>>, vector<8x512xf32>
    %c0_1 = arith.constant 0 : index
    %1 = memref.load %arg2[%c0_1] : memref<1xf32, #tpu.memory_space<smem>>
    %c0_2 = arith.constant 0 : index
    %2 = memref.load %arg3[%c0_2] : memref<1xf32, #tpu.memory_space<smem>>
    %cst = arith.constant 0.000000e+00 : f32
    %3 = vector.broadcast %cst : f32 to vector<8x512xf32>
    %4 = arith.maximumf %0, %3 : vector<8x512xf32>
    %5 = arith.mulf %4, %4 : vector<8x512xf32>
    %6 = vector.broadcast %1 : f32 to vector<8x512xf32>
    %7 = arith.mulf %6, %5 : vector<8x512xf32>
    %8 = vector.broadcast %2 : f32 to vector<8x512xf32>
    %9 = arith.addf %7, %8 : vector<8x512xf32>
    %c0_3 = arith.constant 0 : index
    %c0_4 = arith.constant 0 : index
    %10 = vector.load %arg4[%c0_3, %c0_4] : memref<8x512xf32, #tpu.memory_space<vmem>>, vector<8x512xf32>
    tpu.vector_store %arg4[%c0_3, %c0_4], %9 {strides = array<i32>} : memref<8x512xf32, #tpu.memory_space<vmem>>, vector<8x512xf32>,
    return
  }
  func.func @transform_0(%arg0: i32) -> (i32, i32) {
    %c0_i32 = arith.constant 0 : i32
    %c0_i32_0 = arith.constant 0 : i32
    return %arg0, %c0_i32 : i32, i32
  }
  func.func @transform_1(%arg0: i32) -> i32 {
    %c0_i32 = arith.constant 0 : i32
    %c0_i32_0 = arith.constant 0 : i32
    return %c0_i32 : i32
  }
  func.func @transform_2(%arg0: i32) -> i32 {
    %c0_i32 = arith.constant 0 : i32
    %c0_i32_0 = arith.constant 0 : i32
    return %c0_i32 : i32
  }
  func.func @transform_3(%arg0: i32) -> (i32, i32) {
    %c0_i32 = arith.constant 0 : i32
    %c0_i32_0 = arith.constant 0 : i32
    return %arg0, %c0_i32 : i32, i32
  }
}

</mosaic_0001>

<bundles_post_ra>
// kernel: tpu_custom_call.1
= control target key start
LH: loop header
LB: loop body
LE: loop exit
PB: predicated region body
PF: predicated region fallthrough
CT: control target
= control target key end

     0   :  { %10 = vsyncpa [#allocation5], 0  ;;  %s188_s0 = inlined_call_operand.hbm [shape: f32[4,512], index: 0, kind: input, shape index: {}]   ;;  %s189_s1 = inlined_call_operand.<no memory space> [shape: f32[1], index: 1, kind: input, shape index: {}]   ;;  %s190_s2 = inlined_call_operand.<no memory space> [shape: f32[1], index: 2, kind: input, shape index: {}]   ;;  %s191_s3 = inlined_call_operand.hbm [shape: f32[4,512], index: 3, kind: output, shape index: {}]  }
   0x1   :  { %11 = vsyncpa [#allocation6], 0 }
   0x2   :  { %16 = vsyncadd [#allocation5], 256  ;;  %s128_s12 = smov [#allocation4]   ;;  %s80_s16 = scalar_lea.hbm %s188_s0, 256 }
   0x3   :  { %s17_s13 = sshll.u32 %s128_s12, 4  ;;  %p81_p0 = scmp.ne.s32.totalorder %s188_s0, %s80_s16  ;;  %s18_s13 = int_to_ptr.vmem [resolvable:$true] %s17_s13 }
   0x4   :  { %p84_p1 = scmp.lt.u32.totalorder %s80_s16, %s188_s0 }
   0x6   :  { %p86_p2 = pnand %p84_p1, %p81_p0 }
   0x8   :  { %89 = shalt.err (!%p86_p2)
}
   0x9   :  { %s90_s21 = scalar_lea.vmem %s18_s13, 256  ;;  %s94_s22 = scalar_lea.vmem %s18_s13, 512 }
   0xa   :  { %p91_p3 = scmp.ne.s32.totalorder %s18_s13, %s90_s21  ;;  %p95_p4 = scmp.lt.s32.totalorder %s18_s13, %s18_s13 }
   0xb   :  { %p96_p5 = scmp.lt.s32.totalorder %s94_s22, %s90_s21 }
   0xd   :  { %p97_p6 = por %p96_p5, %p95_p4 }
   0xf   :  { %p98_p7 = pnand %p97_p6, %p91_p3 }
  0x11   :  { %101 = shalt.err (!%p98_p7)
}
  0x12   :  { %s129_s23 = smov 256   ;;  %s130_s24 = smov 16  }
  0x13   :  { %23 = dma.hbm_to_vmem [thread:$0]  %s188_s0, 256, %s18_s13, [#allocation5], %s129_s23, %s129_s23, %s130_s24  }
  0x14   :  { %124 = dma.done.wait [#allocation5], 512  }
  0x15   :  { %125 = vsyncadd [#allocation5], 4294966784  ;;  %v31_v0 = vld [vmem:[#allocation4] sm:$0xff]  ;;  %v32_v1 = vld [vmem:[#allocation4 + $0x8] sm:$0xff]  ;;  %v45_v7 = vstv %s189_s1  ;;  %v50_v12 = vstv %s190_s2 }
  0x16   :  { %v33_v2 = vld [vmem:[#allocation4 + $0x10] sm:$0xff]  ;;  %v37_v3 = vmax.f32 %v31_v0, 0.0  ;;  %v38_v4 = vmax.f32 %v32_v1, 0.0  ;;  %v34_v6 = vld [vmem:[#allocation4 + $0x18] sm:$0xff] }
  0x17   :  { %v39_v5 = vmax.f32 %v33_v2, 0.0  ;;  %v40_v8 = vmax.f32 %v34_v6, 0.0 }
  0x18   :  { %v41_v9 = vmul.f32 %v37_v3, %v37_v3  ;;  %v42_v10 = vmul.f32 %v38_v4, %v38_v4 }
  0x19   :  { %v43_v11 = vmul.f32 %v39_v5, %v39_v5  ;;  %v44_v13 = vmul.f32 %v40_v8, %v40_v8 }
  0x1a   :  { %v46_v14 = vmul.f32 %v45_v7, %v41_v9  ;;  %v47_v15 = vmul.f32 %v45_v7, %v42_v10 }
  0x1b   :  { %v48_v16 = vmul.f32 %v45_v7, %v43_v11  ;;  %v49_v17 = vmul.f32 %v45_v7, %v44_v13 }
  0x1c   :  { %v51_v18 = vadd.f32 %v50_v12, %v46_v14  ;;  %v52_v19 = vadd.f32 %v50_v12, %v47_v15 }
  0x1d   :  { %v53_v20 = vadd.f32 %v50_v12, %v48_v16  ;;  %v54_v21 = vadd.f32 %v50_v12, %v49_v17 }
  0x1e   :  { %55 = vst [vmem:[#allocation7] sm:$0xff] %v51_v18  ;;  %56 = vst [vmem:[#allocation7 + $0x8] sm:$0xff] %v52_v19 }
  0x1f   :  { %57 = vst [vmem:[#allocation7 + $0x10] sm:$0xff] %v53_v20  ;;  %58 = vst [vmem:[#allocation7 + $0x18] sm:$0xff] %v54_v21 }
  0x20   :  { %63 = vsyncadd [#allocation6], 256  ;;  %s131_s0 = smov [#allocation7]  }
  0x21   :  { %s64_s1 = sshll.u32 %s131_s0, 4  ;;  %s65_s1 = int_to_ptr.vmem [resolvable:$true] %s64_s1 }
  0x22   :  { %s102_s4 = scalar_lea.vmem %s65_s1, 256  ;;  %s106_s2 = scalar_lea.vmem %s65_s1, 512 }
  0x23   :  { %p103_p8 = scmp.ne.s32.totalorder %s65_s1, %s102_s4  ;;  %p107_p9 = scmp.lt.s32.totalorder %s65_s1, %s65_s1 }
  0x24   :  { %p108_p10 = scmp.lt.s32.totalorder %s106_s2, %s102_s4 }
  0x26   :  { %p109_p11 = por %p108_p10, %p107_p9 }
  0x28   :  { %p110_p12 = pnand %p109_p11, %p103_p8 }
  0x2a   :  { %113 = shalt.err (!%p110_p12)
}
  0x2b   :  { %s114_s7 = scalar_lea.hbm %s191_s3, 256 }
  0x2c   :  { %p115_p13 = scmp.ne.s32.totalorder %s191_s3, %s114_s7  ;;  %p118_p0 = scmp.lt.u32.totalorder %s114_s7, %s191_s3 }
  0x2e   :  { %p120_p1 = pnand %p118_p0, %p115_p13 }
  0x30   :  { %123 = shalt.err (!%p120_p1)
}
  0x31   :  { %70 = dma.vmem_to_hbm [thread:$0]  %s65_s1, 256, %s191_s3, [#allocation6], %s129_s23, %s129_s23, %s130_s24  }
  0x32   :  { %126 = dma.done.wait [#allocation6], 512  }
  0x33   :  { %127 = vsyncadd [#allocation6], 4294966784 }
  0x34   :  { %74 = vsyncpa [#allocation5], 1 }
  0x35   :  { %75 = vsyncpa [#allocation6], 1 }

</bundles_post_ra>
